<compile_context>
chip_gen: v6e
topology: v6e:2x2x1
jax: 0.10.0
libtpu: 0.0.40
codegen_flags: <defaults>
</compile_context>

<pallas_src>
import jax
import jax.numpy as jnp
from jax import lax
from jax.experimental import pallas as pl
from jax.experimental.pallas import tpu as pltpu


def lr_kernel(xT_ref, w_ref, b_ref, out_ref):
    # xT_ref : (F, TB)  int32   feature indices, batch on lanes
    # w_ref  : (N, 1)   float32 linear embedding table (resident across grid)
    # b_ref  : (1, 1)   float32 bias (SMEM scalar)
    # out_ref: (1, TB)  float32 logits, lane-dense
    F, TB = xT_ref.shape
    N = w_ref.shape[0]

    # Vocabulary ids along sublanes, batch along lanes.
    feat_ids = lax.broadcasted_iota(jnp.int32, (N, TB), 0)          # (N, TB)
    # Hoist the lane-broadcast of the weight column out of the field loop
    # (JAX does not CSE broadcast_in_dim).
    w_bcast = jnp.broadcast_to(w_ref[...], (N, TB))                 # (N, TB)

    # Start the accumulator at the bias (splat SMEM scalar across lanes).
    acc = jnp.full((1, TB), b_ref[0, 0], dtype=jnp.float32)         # (1, TB)

    # F is small and static (field_num = 4) -> unrolled VPU compare/select,
    # reduce over the vocab (sublane) axis.
    for f in range(F):
        idx_row = xT_ref[f:f + 1, :]                                # (1, TB)
        hit = idx_row == feat_ids                                   # (N, TB)
        acc = acc + jnp.sum(jnp.where(hit, w_bcast, 0.0),
                            axis=0, keepdims=True)                  # (1, TB)

    out_ref[...] = acc


def lr_forward(x, weight, bias, *, tb=1024):
    """x: (B, F) int32 indices; weight: (N, 1) f32; bias: (1, 1) f32 -> (B, 1) f32."""
    B, F = x.shape
    N = weight.shape[0]

    if B <= tb:
        TB = B                      # single tile; full-dim blocks are always legal
        Bp = B
    else:
        TB = tb                     # tb is a multiple of 128 -> lane-aligned blocks
        Bp = ((B + TB - 1) // TB) * TB
    if Bp != B:
        # Pad with index 0 (contributes to rows that are sliced off below).
        x = jnp.pad(x, ((0, Bp - B), (0, 0)))

    xT = x.T                        # (F, Bp): batch on lanes (lane-dense layout plumbing)
    grid = (Bp // TB,)

    out = pl.pallas_call(
        lr_kernel,
        out_shape=jax.ShapeDtypeStruct((1, Bp), jnp.float32),
        grid=grid,
        in_specs=[
            pl.BlockSpec((F, TB), lambda i: (0, i)),                 # x tile (pipelined)
            pl.BlockSpec((N, 1), lambda i: (0, 0)),                  # weight, resident
            pl.BlockSpec(memory_space=pltpu.MemorySpace.SMEM),       # bias scalar
        ],
        out_specs=pl.BlockSpec((1, TB), lambda i: (0, i)),           # lane-dense output
        compiler_params=pltpu.CompilerParams(
            dimension_semantics=("parallel",)),
    )(xT, weight, bias)

    return out.reshape(-1)[:B].reshape(B, 1)


if __name__ == "__main__":
    # args.feature = 128 (vocabulary size), args.field = 4, batch = 8
    batch, field_num, feature_num = 8, 4, 128

    key = jax.random.PRNGKey(0)
    k_idx, k_w = jax.random.split(key)

    # Deterministic synthetic parameters (Embedding(feature_num, 1) + scalar bias).
    weight = (0.01 * jax.random.normal(k_w, (feature_num, 1))).astype(jnp.float32)
    bias = jnp.full((1, 1), 0.1, dtype=jnp.float32)

    # Feature indices per (batch, field).
    x = jax.random.randint(k_idx, (batch, field_num), 0, feature_num, dtype=jnp.int32)

    out = jax.block_until_ready(lr_forward(x, weight, bias))

    # Pure-JAX reference: gather + field-sum + bias.
    ref = jnp.sum(weight[x, 0], axis=1, keepdims=True) + bias[0, 0]
    assert out.shape == (batch, 1)
    assert jnp.allclose(out, ref, atol=1e-5, rtol=1e-5)

    # Exercise the multi-tile grid path (with batch padding) at a still-small size.
    batch2 = 300
    x2 = jax.random.randint(jax.random.PRNGKey(1), (batch2, field_num), 0,
                            feature_num, dtype=jnp.int32)
    out2 = jax.block_until_ready(lr_forward(x2, weight, bias, tb=128))
    ref2 = jnp.sum(weight[x2, 0], axis=1, keepdims=True) + bias[0, 0]
    assert out2.shape == (batch2, 1)
    assert jnp.allclose(out2, ref2, atol=1e-5, rtol=1e-5)

    print("KERNEL_OK")
</pallas_src>

<mosaic_0001>
module attributes {stable_mosaic.version = 11 : i64} {
  func.func @lr_kernel(%arg0: i32, %arg1: memref<4x8xi32, #tpu.memory_space<vmem>>, %arg2: memref<128x1xf32, #tpu.memory_space<vmem>>, %arg3: memref<1x1xf32, #tpu.memory_space<smem>>, %arg4: memref<1x8xf32, #tpu.memory_space<vmem>>) attributes {dimension_semantics = [#tpu.dimension_semantics<parallel>], iteration_bounds = array<i64: 1>, scalar_prefetch = 0 : i64, scratch_operands = 0 : i64, tpu.core_type = #tpu.core_type<tc>, window_params = [{transform_indices = @transform_0, window_bounds = array<i64: 4, 8>}, {pipeline_mode = #tpu.pipeline_mode<synchronous>, transform_indices = @transform_1, window_bounds = array<i64: 128, 1>}, {transform_indices = @transform_2, window_bounds = array<i64: 1, 1>}, {transform_indices = @transform_3, window_bounds = array<i64: 1, 8>}]} {
    %0 = tpu.iota {dimensions = array<i32: 0>} : vector<128x8xi32>
    %c0 = arith.constant 0 : index
    %c0_0 = arith.constant 0 : index
    %1 = vector.load %arg2[%c0, %c0_0] : memref<128x1xf32, #tpu.memory_space<vmem>>, vector<128x1xf32>
    %2 = vector.shape_cast %1 : vector<128x1xf32> to vector<128x1xf32>
    %3 = vector.broadcast %2 : vector<128x1xf32> to vector<128x8xf32>
    %c0_1 = arith.constant 0 : index
    %c0_2 = arith.constant 0 : index
    %4 = memref.load %arg3[%c0_1, %c0_2] : memref<1x1xf32, #tpu.memory_space<smem>>
    %5 = vector.broadcast %4 : f32 to vector<1x8xf32>
    %c0_3 = arith.constant 0 : index
    %c0_4 = arith.constant 0 : index
    %6 = vector.load %arg1[%c0_3, %c0_4] : memref<4x8xi32, #tpu.memory_space<vmem>>, vector<1x8xi32>
    %7 = vector.broadcast %6 : vector<1x8xi32> to vector<128x8xi32>
    %8 = arith.cmpi eq, %7, %0 : vector<128x8xi32>
    %cst = arith.constant 0.000000e+00 : f32
    %9 = vector.broadcast %cst : f32 to vector<128x8xf32>
    %10 = arith.select %8, %3, %9 : vector<128x8xi1>, vector<128x8xf32>
    %cst_5 = arith.constant dense<0.000000e+00> : vector<8xf32>
    %11 = vector.multi_reduction <add>, %10, %cst_5 [0] : vector<128x8xf32> to vector<8xf32>
    %12 = vector.shape_cast %11 : vector<8xf32> to vector<1x8xf32>
    %13 = arith.addf %5, %12 : vector<1x8xf32>
    %c1 = arith.constant 1 : index
    %c0_6 = arith.constant 0 : index
    %14 = vector.load %arg1[%c1, %c0_6] : memref<4x8xi32, #tpu.memory_space<vmem>>, vector<1x8xi32>
    %15 = vector.broadcast %14 : vector<1x8xi32> to vector<128x8xi32>
    %16 = arith.cmpi eq, %15, %0 : vector<128x8xi32>
    %cst_7 = arith.constant 0.000000e+00 : f32
    %17 = vector.broadcast %cst_7 : f32 to vector<128x8xf32>
    %18 = arith.select %16, %3, %17 : vector<128x8xi1>, vector<128x8xf32>
    %cst_8 = arith.constant dense<0.000000e+00> : vector<8xf32>
    %19 = vector.multi_reduction <add>, %18, %cst_8 [0] : vector<128x8xf32> to vector<8xf32>
    %20 = vector.shape_cast %19 : vector<8xf32> to vector<1x8xf32>
    %21 = arith.addf %13, %20 : vector<1x8xf32>
    %c2 = arith.constant 2 : index
    %c0_9 = arith.constant 0 : index
    %22 = vector.load %arg1[%c2, %c0_9] : memref<4x8xi32, #tpu.memory_space<vmem>>, vector<1x8xi32>
    %23 = vector.broadcast %22 : vector<1x8xi32> to vector<128x8xi32>
    %24 = arith.cmpi eq, %23, %0 : vector<128x8xi32>
    %cst_10 = arith.constant 0.000000e+00 : f32
    %25 = vector.broadcast %cst_10 : f32 to vector<128x8xf32>
    %26 = arith.select %24, %3, %25 : vector<128x8xi1>, vector<128x8xf32>
    %cst_11 = arith.constant dense<0.000000e+00> : vector<8xf32>
    %27 = vector.multi_reduction <add>, %26, %cst_11 [0] : vector<128x8xf32> to vector<8xf32>
    %28 = vector.shape_cast %27 : vector<8xf32> to vector<1x8xf32>
    %29 = arith.addf %21, %28 : vector<1x8xf32>
    %c3 = arith.constant 3 : index
    %c0_12 = arith.constant 0 : index
    %30 = vector.load %arg1[%c3, %c0_12] : memref<4x8xi32, #tpu.memory_space<vmem>>, vector<1x8xi32>
    %31 = vector.broadcast %30 : vector<1x8xi32> to vector<128x8xi32>
    %32 = arith.cmpi eq, %31, %0 : vector<128x8xi32>
    %cst_13 = arith.constant 0.000000e+00 : f32
    %33 = vector.broadcast %cst_13 : f32 to vector<128x8xf32>
    %34 = arith.select %32, %3, %33 : vector<128x8xi1>, vector<128x8xf32>
    %cst_14 = arith.constant dense<0.000000e+00> : vector<8xf32>
    %35 = vector.multi_reduction <add>, %34, %cst_14 [0] : vector<128x8xf32> to vector<8xf32>
    %36 = vector.shape_cast %35 : vector<8xf32> to vector<1x8xf32>
    %37 = arith.addf %29, %36 : vector<1x8xf32>
    %c0_15 = arith.constant 0 : index
    %c0_16 = arith.constant 0 : index
    %38 = vector.load %arg4[%c0_15, %c0_16] : memref<1x8xf32, #tpu.memory_space<vmem>>, vector<1x8xf32>
    tpu.vector_store %arg4[%c0_15, %c0_16], %37 {strides = array<i32>} : memref<1x8xf32, #tpu.memory_space<vmem>>, vector<1x8xf32>,
    return
  }
  func.func @transform_0(%arg0: i32) -> (i32, i32) {
    %c0_i32 = arith.constant 0 : i32
    %c0_i32_0 = arith.constant 0 : i32
    return %c0_i32, %arg0 : i32, i32
  }
  func.func @transform_1(%arg0: i32) -> (i32, i32) {
    %c0_i32 = arith.constant 0 : i32
    %c0_i32_0 = arith.constant 0 : i32
    %c0_i32_1 = arith.constant 0 : i32
    return %c0_i32, %c0_i32_0 : i32, i32
  }
  func.func @transform_2(%arg0: i32) -> (i32, i32) {
    %c0_i32 = arith.constant 0 : i32
    %c0_i32_0 = arith.constant 0 : i32
    %c0_i32_1 = arith.constant 0 : i32
    return %c0_i32, %c0_i32_0 : i32, i32
  }
  func.func @transform_3(%arg0: i32) -> (i32, i32) {
    %c0_i32 = arith.constant 0 : i32
    %c0_i32_0 = arith.constant 0 : i32
    return %c0_i32, %arg0 : i32, i32
  }
}

</mosaic_0001>

<bundles_post_ra>
// kernel: tpu_custom_call.1
= control target key start
LH: loop header
LB: loop body
LE: loop exit
PB: predicated region body
PF: predicated region fallthrough
CT: control target
= control target key end

     0   :  { %v478_v2 = vmov 0   ;;  %s970_s0 = inlined_call_operand.vmem [shape: s32[4,8], index: 0, kind: input, shape index: {}]   ;;  %s971_s1 = inlined_call_operand.vmem [shape: f32[128,1], index: 1, kind: input, shape index: {}]   ;;  %s972_s2 = inlined_call_operand.<no memory space> [shape: f32[1,1], index: 2, kind: input, shape index: {}]   ;;  %s973_s3 = inlined_call_operand.hbm [shape: f32[1,8], index: 3, kind: output, shape index: {}]  }
   0x1   :  { %v35_v0 = vld [vmem:[%s971_s1 + $0x10] sm:$0xff]  ;;  %v33_v1 = vld [vmem:[%s971_s1] sm:$0xff]  ;;  %455 = vset.pattern.permute.xlu1 %v478_v2  ;;  %454 = vset.pattern.permute.xlu0 %v478_v2  ;;  %v36_v3 = vld [vmem:[%s971_s1 + $0x18] sm:$0xff] }
   0x2   :  { %61 = vperm.xlu1 %455, %v35_v0   ;;  %51 = vperm.xlu0 %454, %v33_v1   ;;  %v34_v4 = vld [vmem:[%s971_s1 + $0x8] sm:$0xff]  ;;  %v37_v6 = vld [vmem:[%s971_s1 + $0x20] sm:$0xff] }
   0x3   :  { %v38_v5 = vld [vmem:[%s971_s1 + $0x28] sm:$0xff] }
   0x6   :  { %66 = vperm.xlu1 %455, %v36_v3   ;;  %56 = vperm.xlu0 %454, %v34_v4  }
   0x7   :  { %9 = vsyncpa [#allocation4], 0  ;;  %v40_v7 = vld [vmem:[%s971_s1 + $0x38] sm:$0xff]  ;;  %v39_v8 = vld [vmem:[%s971_s1 + $0x30] sm:$0xff]  ;;  %v16_v17 = vlaneseq  ;;  %vm168_vm0 = vcmask 64512   ;;  %s479_s25 = smov [#allocation3]  }
   0x8   :  { %v42_v9 = vld [vmem:[%s971_s1 + $0x48] sm:$0xff]  ;;  %v41_v10 = vld [vmem:[%s971_s1 + $0x40] sm:$0xff]  ;;  %v44_v11 = vld [vmem:[%s971_s1 + $0x58] sm:$0xff]  ;;  %s440_s26 = sshll.u32 %s479_s25, 4  ;;  %s441_s26 = int_to_ptr.vmem [resolvable:$true] %s440_s26 }
   0x9   :  { %v43_v12 = vld [vmem:[%s971_s1 + $0x50] sm:$0xff]  ;;  %v46_v13 = vld [vmem:[%s971_s1 + $0x68] sm:$0xff]  ;;  %v45_v14 = vld [vmem:[%s971_s1 + $0x60] sm:$0xff]  ;;  %v17_v18 = vshrl.u32 %v16_v17, 7  ;;  %s456_s27 = scalar_lea.vmem %s441_s26, 16  ;;  %s460_s28 = scalar_lea.vmem %s441_s26, 32 }
   0xa   :  { %76 = vperm.xlu1 %455, %v38_v5   ;;  %71 = vperm.xlu0 %454, %v37_v6   ;;  %v48_v15 = vld [vmem:[%s971_s1 + $0x78] sm:$0xff]  ;;  %v47_v16 = vld [vmem:[%s971_s1 + $0x70] sm:$0xff]  ;;  %v551_v20 = vld [vmem:[%s970_s0] ss:$0 sm:$0xff]  ;;  %p457_p0 = scmp.ne.s32.totalorder %s441_s26, %s456_s27  ;;  %p461_p1 = scmp.lt.s32.totalorder %s441_s26, %s441_s26 }
   0xb   :  { %v19_v19 = vadd.s32 16, %v17_v18  ;;  %v556_v21 = vld [vmem:[%s970_s0 + $0x1] ss:$0 sm:$0xff]  ;;  %v558_v22 = vadd.s32 24, %v17_v18  ;;  %v563_v23 = vld [vmem:[%s970_s0 + $0x2] ss:$0 sm:$0xff]  ;;  %vm136_vm3 = vcmp.eq.s32.totalorder %v551_v20, %v17_v18  ;;  %p462_p2 = scmp.lt.s32.totalorder %s460_s28, %s456_s27 }
   0xc   :  { %v568_v24 = vld [vmem:[%s970_s0 + $0x3] ss:$0 sm:$0xff]  ;;  %v570_v25 = vadd.s32 8, %v17_v18  ;;  %v575_v26 = vadd.s32 40, %v17_v18  ;;  %vm212_vm6 = vcmp.eq.s32.totalorder %v556_v21, %v17_v18  ;;  %v580_v27 = vadd.s32 32, %v17_v18 }
   0xd   :  { %vm138_vm1 = vcmp.eq.s32.totalorder %v551_v20, %v19_v19  ;;  %vm214_vm2 = vcmp.eq.s32.totalorder %v556_v21, %v19_v19  ;;  %vm289_vm4 = vcmp.eq.s32.totalorder %v563_v23, %v19_v19  ;;  %vm364_vm5 = vcmp.eq.s32.totalorder %v568_v24, %v19_v19  ;;  %p463_p3 = por %p462_p2, %p461_p1 }
   0xe   :  { %86 = vperm.xlu1 %455, %v40_v7   ;;  %81 = vperm.xlu0 %454, %v39_v8   ;;  %vm287_vm7 = vcmp.eq.s32.totalorder %v563_v23, %v17_v18  ;;  %vm362_vm8 = vcmp.eq.s32.totalorder %v568_v24, %v17_v18  ;;  %vm215_vm10 = vcmp.eq.s32.totalorder %v556_v21, %v558_v22  ;;  %v600_v28 = vadd.s32 56, %v17_v18 }
   0xf   :  { %vm290_vm11 = vcmp.eq.s32.totalorder %v563_v23, %v558_v22  ;;  %vm137_vm13 = vcmp.eq.s32.totalorder %v551_v20, %v570_v25  ;;  %vm213_vm14 = vcmp.eq.s32.totalorder %v556_v21, %v570_v25  ;;  %v602_v29 = vadd.s32 48, %v17_v18  ;;  %p464_p4 = pnand %p463_p3, %p457_p0 }
  0x10   :  { %v606_v32 = vadd.s32 72, %v17_v18  ;;  %v608_v33 = vadd.s32 64, %v17_v18  ;;  %v610_v34 = vadd.s32 88, %v17_v18  ;;  %v612_v35 = vadd.s32 80, %v17_v18 }
  0x11   :  { %vm217_vm12 = vcmp.eq.s32.totalorder %v556_v21, %v575_v26  ;;  %vm292_vm9 = vcmp.eq.s32.totalorder %v563_v23, %v575_v26  ;;  %vm367_vm15 = vcmp.eq.s32.totalorder %v568_v24, %v575_v26  ;;  %v632_v40 = vadd.s32 104, %v17_v18 }
  0x12   :  { %96 = vperm.xlu1 %455, %v42_v9   ;;  %91 = vperm.xlu0 %454, %v41_v10   ;;  %v634_v41 = vadd.s32 96, %v17_v18  ;;  %v636_v42 = vadd.s32 120, %v17_v18  ;;  %v638_v43 = vadd.s32 112, %v17_v18 }
  0x16   :  { %106 = vperm.xlu1 %455, %v44_v11   ;;  %101 = vperm.xlu0 %454, %v43_v12  }
  0x1a   :  { %116 = vperm.xlu1 %455, %v46_v13   ;;  %111 = vperm.xlu0 %454, %v45_v14  }
  0x1e   :  { %126 = vperm.xlu1 %455, %v48_v15   ;;  %121 = vperm.xlu0 %454, %v47_v16  }
  0x7d   :  { %v62_v30 = vpop.permute.xlu1 %61  ;;  %v52_v31 = vpop.permute.xlu0 %51 }
  0x7e   :  { %v154_v36 = vsel %vm138_vm1, %v62_v30, 0.0  ;;  %v230_v37 = vsel %vm214_vm2, %v62_v30, 0.0  ;;  %v305_v38 = vsel %vm289_vm4, %v62_v30, 0.0  ;;  %v380_v39 = vsel %vm364_vm5, %v62_v30, 0.0 }
  0x7f   :  { %vm140_vm1 = vcmp.eq.s32.totalorder %v551_v20, %v580_v27  ;;  %vm216_vm2 = vcmp.eq.s32.totalorder %v556_v21, %v580_v27  ;;  %v152_v44 = vsel %vm136_vm3, %v52_v31, 0.0  ;;  %v228_v45 = vsel %vm212_vm6, %v52_v31, 0.0 }
  0x80   :  { %v303_v46 = vsel %vm287_vm7, %v52_v31, 0.0  ;;  %v378_v47 = vsel %vm362_vm8, %v52_v31, 0.0  ;;  %vm291_vm4 = vcmp.eq.s32.totalorder %v563_v23, %v580_v27  ;;  %v172_v48 = vsel %vm168_vm0, %v154_v36, 0.0 }
  0x81   :  { %v247_v49 = vsel %vm168_vm0, %v230_v37, 0.0  ;;  %v322_v50 = vsel %vm168_vm0, %v305_v38, 0.0  ;;  %v397_v51 = vsel %vm168_vm0, %v380_v39, 0.0  ;;  %v67_v52 = vpop.permute.xlu1 %66  ;;  %v57_v53 = vpop.permute.xlu0 %56  ;;  %vm366_vm3 = vcmp.eq.s32.totalorder %v568_v24, %v580_v27 }
  0x82   :  { %v169_v54 = vsel %vm168_vm0, %v152_v44, 0.0  ;;  %v244_v55 = vsel %vm168_vm0, %v228_v45, 0.0  ;;  %v319_v56 = vsel %vm168_vm0, %v303_v46, 0.0  ;;  %v394_v57 = vsel %vm168_vm0, %v378_v47, 0.0 }
  0x83   :  { %vm974_vm5 = vcmp.eq.s32.totalorder %v551_v20, %v558_v22  ;;  %v231_v59 = vsel %vm215_vm10, %v67_v52, 0.0  ;;  %v306_v60 = vsel %vm290_vm11, %v67_v52, 0.0  ;;  %vm975_vm6 = vcmp.eq.s32.totalorder %v568_v24, %v558_v22 }
  0x84   :  { %v155_v58 = vsel %vm974_vm5, %v67_v52, 0.0  ;;  %v381_v61 = vsel %vm975_vm6, %v67_v52, 0.0  ;;  %vm143_vm7 = vcmp.eq.s32.totalorder %v551_v20, %v600_v28  ;;  %v153_v62 = vsel %vm137_vm13, %v57_v53, 0.0 }
  0x85   :  { %v229_v63 = vsel %vm213_vm14, %v57_v53, 0.0  ;;  %vm976_vm8 = vcmp.eq.s32.totalorder %v563_v23, %v570_v25  ;;  %vm977_vm10 = vcmp.eq.s32.totalorder %v568_v24, %v570_v25  ;;  %vm219_vm11 = vcmp.eq.s32.totalorder %v556_v21, %v600_v28  ;;  %v77_v6 = vpop.permute.xlu1 %76  ;;  %v72_v15 = vpop.permute.xlu0 %71 }
  0x86   :  { %v304_v0 = vsel %vm976_vm8, %v57_v53, 0.0  ;;  %v379_v1 = vsel %vm977_vm10, %v57_v53, 0.0  ;;  %vm294_vm5 = vcmp.eq.s32.totalorder %v563_v23, %v600_v28  ;;  %vm369_vm13 = vcmp.eq.s32.totalorder %v568_v24, %v600_v28 }
  0x87   :  { %v170_v2 = vsel %vm168_vm0, %v153_v62, 0.0  ;;  %v245_v3 = vsel %vm168_vm0, %v229_v63, 0.0  ;;  %v320_v4 = vsel %vm168_vm0, %v304_v0, 0.0  ;;  %v395_v5 = vsel %vm168_vm0, %v379_v1, 0.0 }
  0x88   :  { %vm142_vm14 = vcmp.eq.s32.totalorder %v551_v20, %v602_v29  ;;  %v171_v7 = vadd.f32 %v170_v2, %v169_v54  ;;  %v246_v8 = vadd.f32 %v245_v3, %v244_v55  ;;  %v321_v9 = vadd.f32 %v320_v4, %v319_v56 }
  0x89   :  { %v396_v10 = vadd.f32 %v395_v5, %v394_v57  ;;  %vm293_vm8 = vcmp.eq.s32.totalorder %v563_v23, %v602_v29  ;;  %v174_v11 = vsel %vm168_vm0, %v155_v58, 0.0  ;;  %v249_v12 = vsel %vm168_vm0, %v231_v59, 0.0  ;;  %v87_v44 = vpop.permute.xlu1 %86  ;;  %v82_v56 = vpop.permute.xlu0 %81 }
  0x8a   :  { %v324_v13 = vsel %vm168_vm0, %v306_v60, 0.0  ;;  %v399_v14 = vsel %vm168_vm0, %v381_v61, 0.0  ;;  %v173_v16 = vadd.f32 %v172_v48, %v171_v7  ;;  %v248_v17 = vadd.f32 %v247_v49, %v246_v8 }
  0x8b   :  { %v323_v18 = vadd.f32 %v322_v50, %v321_v9  ;;  %vm978_vm6 = vcmp.eq.s32.totalorder %v551_v20, %v575_v26  ;;  %v398_v22 = vadd.f32 %v397_v51, %v396_v10  ;;  %v233_v25 = vsel %vm217_vm12, %v77_v6, 0.0 }
  0x8c   :  { %v157_v19 = vsel %vm978_vm6, %v77_v6, 0.0  ;;  %v308_v30 = vsel %vm292_vm9, %v77_v6, 0.0  ;;  %v383_v31 = vsel %vm367_vm15, %v77_v6, 0.0  ;;  %vm145_vm10 = vcmp.eq.s32.totalorder %v551_v20, %v606_v32 }
  0x8d   :  { %v156_v36 = vsel %vm140_vm1, %v72_v15, 0.0  ;;  %v175_v37 = vadd.f32 %v174_v11, %v173_v16  ;;  %v232_v38 = vsel %vm216_vm2, %v72_v15, 0.0  ;;  %v250_v39 = vadd.f32 %v249_v12, %v248_v17  ;;  %v97_v4 = vpop.permute.xlu1 %96  ;;  %v92_v16 = vpop.permute.xlu0 %91 }
  0x8e   :  { %vm221_vm9 = vcmp.eq.s32.totalorder %v556_v21, %v606_v32  ;;  %vm296_vm12 = vcmp.eq.s32.totalorder %v563_v23, %v606_v32  ;;  %vm371_vm15 = vcmp.eq.s32.totalorder %v568_v24, %v606_v32  ;;  %v176_v26 = vsel %vm168_vm0, %v156_v36, 0.0 }
  0x8f   :  { %v251_v45 = vsel %vm168_vm0, %v232_v38, 0.0  ;;  %v307_v46 = vsel %vm291_vm4, %v72_v15, 0.0  ;;  %v325_v47 = vadd.f32 %v324_v13, %v323_v18  ;;  %vm144_vm1 = vcmp.eq.s32.totalorder %v551_v20, %v608_v33 }
  0x90   :  { %vm220_vm2 = vcmp.eq.s32.totalorder %v556_v21, %v608_v33  ;;  %v177_v48 = vadd.f32 %v176_v26, %v175_v37  ;;  %v252_v49 = vadd.f32 %v251_v45, %v250_v39  ;;  %v326_v50 = vsel %vm168_vm0, %v307_v46, 0.0 }
  0x91   :  { %v382_v51 = vsel %vm366_vm3, %v72_v15, 0.0  ;;  %vm295_vm6 = vcmp.eq.s32.totalorder %v563_v23, %v608_v33  ;;  %v178_v52 = vsel %vm168_vm0, %v157_v19, 0.0  ;;  %v253_v53 = vsel %vm168_vm0, %v233_v25, 0.0 }
  0x92   :  { %v327_v54 = vadd.f32 %v326_v50, %v325_v47  ;;  %v400_v55 = vadd.f32 %v399_v14, %v398_v22  ;;  %vm370_vm4 = vcmp.eq.s32.totalorder %v568_v24, %v608_v33  ;;  %v328_v57 = vsel %vm168_vm0, %v308_v30, 0.0 }
  0x93   :  { %v403_v58 = vsel %vm168_vm0, %v383_v31, 0.0  ;;  %v401_v27 = vsel %vm168_vm0, %v382_v51, 0.0  ;;  %v159_v59 = vsel %vm143_vm7, %v87_v44, 0.0  ;;  %v235_v61 = vsel %vm219_vm11, %v87_v44, 0.0 }
  0x94   :  { %v402_v60 = vadd.f32 %v401_v27, %v400_v55  ;;  %v310_v62 = vsel %vm294_vm5, %v87_v44, 0.0  ;;  %v385_v63 = vsel %vm369_vm13, %v87_v44, 0.0  ;;  %vm147_vm3 = vcmp.eq.s32.totalorder %v551_v20, %v610_v34  ;;  %v107_v44 = vpop.permute.xlu1 %106  ;;  %v102_v55 = vpop.permute.xlu0 %101 }
  0x95   :  { %v158_v0 = vsel %vm142_vm14, %v82_v56, 0.0  ;;  %v179_v1 = vadd.f32 %v178_v52, %v177_v48  ;;  %vm979_vm7 = vcmp.eq.s32.totalorder %v556_v21, %v602_v29  ;;  %v254_v3 = vadd.f32 %v253_v53, %v252_v49 }
  0x96   :  { %v234_v2 = vsel %vm979_vm7, %v82_v56, 0.0  ;;  %vm223_vm11 = vcmp.eq.s32.totalorder %v556_v21, %v610_v34  ;;  %v180_v28 = vsel %vm168_vm0, %v158_v0, 0.0  ;;  %v309_v6 = vsel %vm293_vm8, %v82_v56, 0.0 }
  0x97   :  { %v255_v5 = vsel %vm168_vm0, %v234_v2, 0.0  ;;  %v329_v7 = vadd.f32 %v328_v57, %v327_v54  ;;  %vm146_vm14 = vcmp.eq.s32.totalorder %v551_v20, %v612_v35  ;;  %vm222_vm7 = vcmp.eq.s32.totalorder %v556_v21, %v612_v35 }
  0x98   :  { %v181_v8 = vadd.f32 %v180_v28, %v179_v1  ;;  %v256_v9 = vadd.f32 %v255_v5, %v254_v3  ;;  %v330_v10 = vsel %vm168_vm0, %v309_v6, 0.0  ;;  %vm980_vm13 = vcmp.eq.s32.totalorder %v568_v24, %v602_v29  ;;  %v117_v2 = vpop.permute.xlu1 %116 }
  0x99   :  { %v384_v11 = vsel %vm980_vm13, %v82_v56, 0.0  ;;  %vm297_vm5 = vcmp.eq.s32.totalorder %v563_v23, %v612_v35  ;;  %v182_v12 = vsel %vm168_vm0, %v159_v59, 0.0  ;;  %v257_v13 = vsel %vm168_vm0, %v235_v61, 0.0 }
  0x9a   :  { %v331_v14 = vadd.f32 %v330_v10, %v329_v7  ;;  %v404_v15 = vadd.f32 %v403_v58, %v402_v60  ;;  %vm372_vm8 = vcmp.eq.s32.totalorder %v568_v24, %v612_v35  ;;  %v332_v17 = vsel %vm168_vm0, %v310_v62, 0.0 }
  0x9b   :  { %v407_v18 = vsel %vm168_vm0, %v385_v63, 0.0  ;;  %v405_v29 = vsel %vm168_vm0, %v384_v11, 0.0  ;;  %v161_v19 = vsel %vm145_vm10, %v97_v4, 0.0  ;;  %v237_v25 = vsel %vm221_vm9, %v97_v4, 0.0 }
  0x9c   :  { %v406_v22 = vadd.f32 %v405_v29, %v404_v15  ;;  %v312_v30 = vsel %vm296_vm12, %v97_v4, 0.0  ;;  %v387_v31 = vsel %vm371_vm15, %v97_v4, 0.0  ;;  %vm149_vm13 = vcmp.eq.s32.totalorder %v551_v20, %v632_v40 }
  0x9d   :  { %v160_v36 = vsel %vm144_vm1, %v92_v16, 0.0  ;;  %v183_v37 = vadd.f32 %v182_v12, %v181_v8  ;;  %v236_v38 = vsel %vm220_vm2, %v92_v16, 0.0  ;;  %v258_v39 = vadd.f32 %v257_v13, %v256_v9  ;;  %v112_v13 = vpop.permute.xlu0 %111 }
  0x9e   :  { %vm225_vm10 = vcmp.eq.s32.totalorder %v556_v21, %v632_v40  ;;  %vm300_vm9 = vcmp.eq.s32.totalorder %v563_v23, %v632_v40  ;;  %vm375_vm12 = vcmp.eq.s32.totalorder %v568_v24, %v632_v40  ;;  %v184_v32 = vsel %vm168_vm0, %v160_v36, 0.0  ;;  %v127_v36 = vpop.permute.xlu1 %126 }
  0x9f   :  { %v259_v26 = vsel %vm168_vm0, %v236_v38, 0.0  ;;  %v311_v45 = vsel %vm295_vm6, %v92_v16, 0.0  ;;  %v333_v46 = vadd.f32 %v332_v17, %v331_v14  ;;  %vm148_vm15 = vcmp.eq.s32.totalorder %v551_v20, %v634_v41 }
  0xa0   :  { %vm224_vm1 = vcmp.eq.s32.totalorder %v556_v21, %v634_v41  ;;  %v185_v47 = vadd.f32 %v184_v32, %v183_v37  ;;  %v260_v48 = vadd.f32 %v259_v26, %v258_v39  ;;  %v334_v49 = vsel %vm168_vm0, %v311_v45, 0.0 }
  0xa1   :  { %v386_v50 = vsel %vm370_vm4, %v92_v16, 0.0  ;;  %v186_v51 = vsel %vm168_vm0, %v161_v19, 0.0  ;;  %v261_v52 = vsel %vm168_vm0, %v237_v25, 0.0  ;;  %v335_v53 = vadd.f32 %v334_v49, %v333_v46 }
  0xa2   :  { %v408_v54 = vadd.f32 %v407_v18, %v406_v22  ;;  %v336_v56 = vsel %vm168_vm0, %v312_v30, 0.0  ;;  %v411_v57 = vsel %vm168_vm0, %v387_v31, 0.0  ;;  %v409_v33 = vsel %vm168_vm0, %v386_v50, 0.0  ;;  %v122_v50 = vpop.permute.xlu0 %121 }
  0xa3   :  { %v163_v58 = vsel %vm147_vm3, %v107_v44, 0.0  ;;  %vm151_vm4 = vcmp.eq.s32.totalorder %v551_v20, %v636_v42  ;;  %v239_v59 = vsel %vm223_vm11, %v107_v44, 0.0  ;;  %vm981_vm6 = vcmp.eq.s32.totalorder %v563_v23, %v610_v34 }
  0xa4   :  { %v410_v27 = vadd.f32 %v409_v33, %v408_v54  ;;  %v314_v60 = vsel %vm981_vm6, %v107_v44, 0.0  ;;  %vm982_vm2 = vcmp.eq.s32.totalorder %v568_v24, %v610_v34  ;;  %v162_v62 = vsel %vm146_vm14, %v102_v55, 0.0 }
  0xa5   :  { %v389_v61 = vsel %vm982_vm2, %v107_v44, 0.0  ;;  %v187_v63 = vadd.f32 %v186_v51, %v185_v47  ;;  %v238_v0 = vsel %vm222_vm7, %v102_v55, 0.0  ;;  %v262_v1 = vadd.f32 %v261_v52, %v260_v48 }
  0xa6   :  { %vm227_vm3 = vcmp.eq.s32.totalorder %v556_v21, %v636_v42  ;;  %vm302_vm11 = vcmp.eq.s32.totalorder %v563_v23, %v636_v42  ;;  %v188_v34 = vsel %vm168_vm0, %v162_v62, 0.0  ;;  %v263_v3 = vsel %vm168_vm0, %v238_v0, 0.0 }
  0xa7   :  { %v313_v4 = vsel %vm297_vm5, %v102_v55, 0.0  ;;  %v337_v28 = vadd.f32 %v336_v56, %v335_v53  ;;  %vm150_vm14 = vcmp.eq.s32.totalorder %v551_v20, %v638_v43  ;;  %vm226_vm7 = vcmp.eq.s32.totalorder %v556_v21, %v638_v43 }
  0xa8   :  { %v189_v5 = vadd.f32 %v188_v34, %v187_v63  ;;  %v264_v6 = vadd.f32 %v263_v3, %v262_v1  ;;  %v338_v7 = vsel %vm168_vm0, %v313_v4, 0.0  ;;  %v388_v8 = vsel %vm372_vm8, %v102_v55, 0.0 }
  0xa9   :  { %vm301_vm2 = vcmp.eq.s32.totalorder %v563_v23, %v638_v43  ;;  %v190_v9 = vsel %vm168_vm0, %v163_v58, 0.0  ;;  %v265_v10 = vsel %vm168_vm0, %v239_v59, 0.0  ;;  %v339_v11 = vadd.f32 %v338_v7, %v337_v28 }
  0xaa   :  { %v412_v12 = vadd.f32 %v411_v57, %v410_v27  ;;  %vm376_vm5 = vcmp.eq.s32.totalorder %v568_v24, %v638_v43  ;;  %v340_v14 = vsel %vm168_vm0, %v314_v60, 0.0  ;;  %v415_v15 = vsel %vm168_vm0, %v389_v61, 0.0 }
  0xab   :  { %v413_v35 = vsel %vm168_vm0, %v388_v8, 0.0  ;;  %v165_v16 = vsel %vm149_vm13, %v117_v2, 0.0  ;;  %vm377_vm8 = vcmp.eq.s32.totalorder %v568_v24, %v636_v42  ;;  %v241_v18 = vsel %vm225_vm10, %v117_v2, 0.0 }
  0xac   :  { %v414_v17 = vadd.f32 %v413_v35, %v412_v12  ;;  %v316_v29 = vsel %vm300_vm9, %v117_v2, 0.0  ;;  %v391_v19 = vsel %vm375_vm12, %v117_v2, 0.0  ;;  %v164_v22 = vsel %vm148_vm15, %v112_v13, 0.0 }
  0xad   :  { %v191_v25 = vadd.f32 %v190_v9, %v189_v5  ;;  %v240_v30 = vsel %vm224_vm1, %v112_v13, 0.0  ;;  %v266_v31 = vadd.f32 %v265_v10, %v264_v6  ;;  %v192_v37 = vsel %vm168_vm0, %v164_v22, 0.0 }
  0xae   :  { %v267_v38 = vsel %vm168_vm0, %v240_v30, 0.0  ;;  %vm983_vm13 = vcmp.eq.s32.totalorder %v563_v23, %v634_v41  ;;  %v341_v39 = vadd.f32 %v340_v14, %v339_v11  ;;  %vm984_vm10 = vcmp.eq.s32.totalorder %v568_v24, %v634_v41 }
  0xaf   :  { %v315_v40 = vsel %vm983_vm13, %v112_v13, 0.0  ;;  %v193_v44 = vadd.f32 %v192_v37, %v191_v25  ;;  %v268_v32 = vadd.f32 %v267_v38, %v266_v31  ;;  %v390_v45 = vsel %vm984_vm10, %v112_v13, 0.0 }
  0xb0   :  { %v342_v26 = vsel %vm168_vm0, %v315_v40, 0.0  ;;  %v194_v46 = vsel %vm168_vm0, %v165_v16, 0.0  ;;  %v416_v48 = vadd.f32 %v415_v15, %v414_v17  ;;  %v167_v49 = vsel %vm151_vm4, %v127_v36, 0.0 }
  0xb1   :  { %v343_v47 = vadd.f32 %v342_v26, %v341_v39  ;;  %v269_v51 = vsel %vm168_vm0, %v241_v18, 0.0  ;;  %v344_v52 = vsel %vm168_vm0, %v316_v29, 0.0  ;;  %v419_v53 = vsel %vm168_vm0, %v391_v19, 0.0 }
  0xb2   :  { %v417_v54 = vsel %vm168_vm0, %v390_v45, 0.0  ;;  %v198_v41 = vsel %vm168_vm0, %v167_v49, 0.0  ;;  %v243_v56 = vsel %vm227_vm3, %v127_v36, 0.0  ;;  %v318_v57 = vsel %vm302_vm11, %v127_v36, 0.0 }
  0xb3   :  { %v418_v55 = vadd.f32 %v417_v54, %v416_v48  ;;  %v166_v33 = vsel %vm150_vm14, %v122_v50, 0.0  ;;  %v195_v58 = vadd.f32 %v194_v46, %v193_v44  ;;  %v242_v27 = vsel %vm226_vm7, %v122_v50, 0.0 }
  0xb4   :  { %v270_v59 = vadd.f32 %v269_v51, %v268_v32  ;;  %v196_v60 = vsel %vm168_vm0, %v166_v33, 0.0  ;;  %v271_v61 = vsel %vm168_vm0, %v242_v27, 0.0  ;;  %v317_v62 = vsel %vm301_vm2, %v122_v50, 0.0 }
  0xb5   :  { %v345_v63 = vadd.f32 %v344_v52, %v343_v47  ;;  %v197_v0 = vadd.f32 %v196_v60, %v195_v58  ;;  %v346_v20 = vsel %vm168_vm0, %v317_v62, 0.0  ;;  %v392_v2 = vsel %vm376_vm5, %v122_v50, 0.0 }
  0xb6   :  { %v272_v1 = vadd.f32 %v271_v61, %v270_v59  ;;  %v273_v21 = vsel %vm168_vm0, %v243_v56, 0.0  ;;  %v393_v34 = vsel %vm377_vm8, %v127_v36, 0.0  ;;  %v420_v4 = vadd.f32 %v419_v53, %v418_v55 }
  0xb7   :  { %v347_v3 = vadd.f32 %v346_v20, %v345_v63  ;;  %v348_v23 = vsel %vm168_vm0, %v318_v57, 0.0  ;;  %v199_v28 = vadd.f32 %v198_v41, %v197_v0  ;;  %v421_v6 = vsel %vm168_vm0, %v392_v2, 0.0 }
  0xb8   :  { %v274_v5 = vadd.f32 %v273_v21, %v272_v1  ;;  %v422_v8 = vadd.f32 %v421_v6, %v420_v4  ;;  %v423_v9 = vsel %vm168_vm0, %v393_v34, 0.0  ;;  %v130_v31 = vstv %s972_s2 }
  0xb9   :  { %v349_v7 = vadd.f32 %v348_v23, %v347_v3  ;;  %v200_v43 = vrot.slane %v199_v28, 4  ;;  %vm432_vm0 = vcmask 57344  }
  0xba   :  { %v275_v10 = vrot.slane %v274_v5, 4  ;;  %v424_v12 = vadd.f32 %v423_v9, %v422_v8 }
  0xbb   :  { %v350_v11 = vrot.slane %v349_v7, 4  ;;  %v201_v13 = vadd.f32 %v200_v43, %v199_v28 }
  0xbc   :  { %v276_v14 = vadd.f32 %v275_v10, %v274_v5  ;;  %v425_v42 = vrot.slane %v424_v12, 4 }
  0xbd   :  { %v351_v24 = vadd.f32 %v350_v11, %v349_v7  ;;  %v202_v15 = vrot.slane %v201_v13, 2 }
  0xbe   :  { %v277_v35 = vrot.slane %v276_v14, 2  ;;  %v426_v17 = vadd.f32 %v425_v42, %v424_v12 }
  0xbf   :  { %v352_v16 = vrot.slane %v351_v24, 2  ;;  %v203_v18 = vadd.f32 %v202_v15, %v201_v13 }
  0xc0   :  { %v278_v29 = vadd.f32 %v277_v35, %v276_v14  ;;  %v427_v22 = vrot.slane %v426_v17, 2 }
  0xc1   :  { %v353_v19 = vadd.f32 %v352_v16, %v351_v24  ;;  %v204_v25 = vrot.slane %v203_v18, 1 }
  0xc2   :  { %v279_v30 = vrot.slane %v278_v29, 1  ;;  %v428_v36 = vadd.f32 %v427_v22, %v426_v17 }
  0xc3   :  { %v205_v37 = vadd.f32 %v204_v25, %v203_v18  ;;  %v354_v38 = vrot.slane %v353_v19, 1 }
  0xc4   :  { %v280_v39 = vadd.f32 %v279_v30, %v278_v29  ;;  %v429_v44 = vrot.slane %v428_v36, 1 }
  0xc5   :  { %v206_v40 = vadd.f32 %v205_v37, %v130_v31  ;;  %v355_v26 = vadd.f32 %v354_v38, %v353_v19 }
  0xc6   :  { %v430_v46 = vadd.f32 %v429_v44, %v428_v36 }
  0xc7   :  { %v281_v32 = vadd.f32 %v280_v39, %v206_v40 }
  0xc9   :  { %v356_v45 = vadd.f32 %v355_v26, %v281_v32 }
  0xcb   :  { %v431_v47 = vadd.f32 %v430_v46, %v356_v45 }
  0xcd   :  { %433 = vst.msk [vmem:[#allocation3] sm:$0x1] %vm432_vm0, %v431_v47 }
  0xce   :  { %467 = shalt.err (!%p464_p4)
}
  0xcf   :  { %443 = dma.vmem_to_hbm [thread:$0]  %s441_s26, 16, %s973_s3, [#allocation4]  }
  0xd0   :  { %476 = dma.done.wait [#allocation4], 16  }
  0xd1   :  { %477 = vsyncadd [#allocation4], 4294967280 }
  0xd2   :  { %447 = vsyncpa [#allocation4], 1 }

</bundles_post_ra>
